<compile_context>
chip_gen: v5e
topology: v5e:2x2
jax: 0.10.0
libtpu: 0.0.40
codegen_flags: <defaults>
</compile_context>

<pallas_src>
import functools

import jax
import jax.numpy as jnp
from jax.experimental import pallas as pl
from jax.experimental.pallas import tpu as pltpu

_LANE = 128      # lane width (last dim)
_SUBLANE = 8     # f32 sublane height (second-to-last dim)


def _round_up(n, m):
    return ((n + m - 1) // m) * m


def _mlp_kernel(x_ref, w_ref, b_ref, o_ref, act0_ref, act1_ref, *,
                num_layers, in_size, act):
    """Fused MLP, per grid step:
      x_ref:   (TM, in_size)        f32   raw input tile (no host padding)
      w_ref:   (L, F_pad, F_pad)    bf16  weights, (In, Out) layout, zero padded
      b_ref:   (L, F_pad)           f32   biases, zero padded
      o_ref:   (TM, F_pad)          f32   output tile
      act0/1:  (TM, F_pad)          f32   VMEM ping-pong activation scratch
    """
    scratch = (act0_ref, act1_ref)

    # Zero-pad the input tile into VMEM scratch.  Padded lanes must be exactly
    # zero so they stay zero through every layer (zero weight rows/cols, zero
    # bias lanes, relu(0) = tanh(0) = 0).
    src = scratch[0]
    src[...] = jnp.zeros_like(src)
    src[:, :in_size] = x_ref[...].astype(jnp.float32)

    for l in range(num_layers):
        x = src[...]
        # bf16 MXU operands, f32 accumulation.  Weights already (In, Out) so
        # the contraction is in native orientation and the output is lane-dense.
        y = jax.lax.dot_general(
            x.astype(jnp.bfloat16), w_ref[l],
            dimension_numbers=(((1,), (0,)), ((), ())),
            preferred_element_type=jnp.float32,
        ) + b_ref[l:l + 1, :]                       # (TM, F_pad) + (1, F_pad)
        y = jnp.maximum(y, 0.0) if act == "relu" else jnp.tanh(y)
        if l == num_layers - 1:
            o_ref[...] = y.astype(o_ref.dtype)
        else:
            dst = scratch[(l + 1) % 2]
            dst[...] = y
            src = dst


@functools.partial(jax.jit, static_argnames=("act", "out_size"))
def _mlp_forward(x, w_slab, b_slab, *, act, out_size):
    b, in_size = x.shape
    num_layers, _, f_pad = w_slab.shape

    # Batch tile: multiple of 8 sublanes, capped to bound VMEM/vreg pressure.
    tm = min(_round_up(max(b, _SUBLANE), _SUBLANE), 256)
    grid = (pl.cdiv(b, tm),)

    kernel = functools.partial(_mlp_kernel, num_layers=num_layers,
                               in_size=in_size, act=act)
    y = pl.pallas_call(
        kernel,
        out_shape=jax.ShapeDtypeStruct((b, f_pad), jnp.float32),
        grid=grid,
        in_specs=[
            # Activations tiled over batch (partial blocks cover B % TM != 0;
            # padded rows are row-local garbage, dropped on write-back).
            pl.BlockSpec((tm, in_size), lambda i: (i, 0)),
            # Weights / biases: constant index_map -> resident across steps.
            pl.BlockSpec((num_layers, f_pad, f_pad), lambda i: (0, 0, 0)),
            pl.BlockSpec((num_layers, f_pad), lambda i: (0, 0)),
        ],
        out_specs=pl.BlockSpec((tm, f_pad), lambda i: (i, 0)),
        scratch_shapes=[pltpu.VMEM((tm, f_pad), jnp.float32),
                        pltpu.VMEM((tm, f_pad), jnp.float32)],
        compiler_params=pltpu.CompilerParams(
            dimension_semantics=("parallel",),   # v7x: shard batch over 2 TCs
            vmem_limit_bytes=32 * 1024 * 1024,
        ),
    )(x.astype(jnp.float32), w_slab, b_slab)
    return y[:, :out_size].astype(x.dtype)


class MLP:
    """JAX/Pallas port of baselines.deepq.models.MLP (NoiseLinear + ReLU/Tanh)."""

    def __init__(self, hiddens, input_size=4, act="relu", key=None):
        assert act in ("relu", "tanh")
        assert len(hiddens) >= 1
        self.hiddens = list(hiddens)
        self.act = act
        self.input_size = input_size
        self.sigma = 0.0  # NoiseLinear.sigma (never changed -> noise is exactly 0)
        if key is None:
            key = jax.random.PRNGKey(0)

        # Unpadded PyTorch-convention params (out, in) — reference / noise path.
        self.params = []
        in_size = input_size
        for h in self.hiddens:
            key, kw, kb = jax.random.split(key, 3)
            bound = 1.0 / (in_size ** 0.5)  # nn.Linear default init
            w = jax.random.uniform(kw, (h, in_size), jnp.float32, -bound, bound)
            b = jax.random.uniform(kb, (h,), jnp.float32, -bound, bound)
            self.params.append((w, b))
            in_size = h

        # Kernel-layout params: one bf16 weight slab + one f32 bias slab.
        self._w_slab, self._b_slab = self._pack_params(self.params, input_size)

    @staticmethod
    def _pack_params(params, input_size):
        """Pack all layers into one bf16 weight slab and one f32 bias slab.

        Weights are transposed to (In, Out) and zero padded into a common
        (F_pad, F_pad) tile per layer; biases zero padded to F_pad lanes.
        """
        dims = [input_size] + [w.shape[0] for (w, _) in params]
        f_pad = _round_up(max(dims), _LANE)
        num_layers = len(params)
        w_slab = jnp.zeros((num_layers, f_pad, f_pad), jnp.bfloat16)
        b_slab = jnp.zeros((num_layers, f_pad), jnp.float32)
        for l, (w, b) in enumerate(params):
            out_size, in_size = w.shape
            w_slab = w_slab.at[l, :in_size, :out_size].set(
                w.T.astype(jnp.bfloat16))
            b_slab = b_slab.at[l, :out_size].set(b)
        return w_slab, b_slab

    def __call__(self, x, noise_key=None):
        w_slab, b_slab = self._w_slab, self._b_slab
        if self.sigma != 0.0:
            # NoiseLinear noise path: W' = W + sigma*N(0,1), b' = b + sigma*N(0,1).
            # Dead code for the spec's sigma == 0.0; kept for fidelity.
            # TODO(synk): jit this repack if sigma is ever enabled (host repack
            # re-uploads the slabs every call).
            if noise_key is None:
                noise_key = jax.random.PRNGKey(1)
            noisy = []
            for (w, b) in self.params:
                noise_key, kw, kb = jax.random.split(noise_key, 3)
                noisy.append(
                    (w + self.sigma * jax.random.normal(kw, w.shape, w.dtype),
                     b + self.sigma * jax.random.normal(kb, b.shape, b.dtype)))
            w_slab, b_slab = self._pack_params(noisy, self.input_size)
        return _mlp_forward(x, w_slab, b_slab, act=self.act,
                            out_size=self.hiddens[-1])


if __name__ == "__main__":
    key = jax.random.PRNGKey(0)
    k_in, k_model = jax.random.split(key)

    batch, input_size = 2, 4
    hiddens = [32, 32]

    x = jax.random.normal(k_in, (batch, input_size), jnp.float32)

    def ref_f32(x, params, act):
        h = x
        for (w, b) in params:
            h = h @ w.T + b
            h = jnp.maximum(h, 0.0) if act == "relu" else jnp.tanh(h)
        return h

    def ref_bf16(x, params, act):
        # Mirrors the kernel numerics: bf16 operands, f32 accumulation,
        # f32 bias add / activation.
        h = x
        for (w, b) in params:
            y = jax.lax.dot_general(
                h.astype(jnp.bfloat16), w.T.astype(jnp.bfloat16),
                dimension_numbers=(((1,), (0,)), ((), ())),
                preferred_element_type=jnp.float32) + b
            h = jnp.maximum(y, 0.0) if act == "relu" else jnp.tanh(y)
        return h

    for act in ("relu", "tanh"):
        model = MLP(hiddens, input_size=input_size, act=act, key=k_model)
        out = jax.block_until_ready(model(x))
        assert out.shape == (batch, hiddens[-1])
        r_bf = ref_bf16(x, model.params, act)
        r_f32 = ref_f32(x, model.params, act)
        assert jnp.allclose(out, r_bf, atol=2e-2, rtol=2e-2), (act, "bf16 ref")
        assert jnp.allclose(out, r_f32, atol=5e-2, rtol=5e-2), (act, "f32 ref")

    print("KERNEL_OK")
</pallas_src>

<mosaic_0001>
module attributes {stable_mosaic.version = 11 : i64} {
  func.func @_mlp_kernel(%arg0: i32, %arg1: memref<8x4xf32, #tpu.memory_space<vmem>>, %arg2: memref<2x128x128xbf16, #tpu.memory_space<vmem>>, %arg3: memref<2x128xf32, #tpu.memory_space<vmem>>, %arg4: memref<8x128xf32, #tpu.memory_space<vmem>>, %arg5: memref<8x128xf32, #tpu.memory_space<vmem>>, %arg6: memref<8x128xf32, #tpu.memory_space<vmem>>) attributes {dimension_semantics = [#tpu.dimension_semantics<parallel>], iteration_bounds = array<i64: 1>, scalar_prefetch = 0 : i64, scratch_operands = 2 : i64, tpu.core_type = #tpu.core_type<tc>, window_params = [{transform_indices = @transform_0, window_bounds = array<i64: 8, 4>}, {pipeline_mode = #tpu.pipeline_mode<synchronous>, transform_indices = @transform_1, window_bounds = array<i64: 2, 128, 128>}, {pipeline_mode = #tpu.pipeline_mode<synchronous>, transform_indices = @transform_2, window_bounds = array<i64: 2, 128>}, {transform_indices = @transform_3, window_bounds = array<i64: 8, 128>}]} {
    %cst = arith.constant 0.000000e+00 : f32
    %0 = vector.broadcast %cst : f32 to vector<8x128xf32>
    %c0 = arith.constant 0 : index
    %c0_0 = arith.constant 0 : index
    %1 = vector.load %arg5[%c0, %c0_0] : memref<8x128xf32, #tpu.memory_space<vmem>>, vector<8x128xf32>
    tpu.vector_store %arg5[%c0, %c0_0], %0 {strides = array<i32>} : memref<8x128xf32, #tpu.memory_space<vmem>>, vector<8x128xf32>,
    %c0_1 = arith.constant 0 : index
    %c0_2 = arith.constant 0 : index
    %2 = vector.load %arg1[%c0_1, %c0_2] : memref<8x4xf32, #tpu.memory_space<vmem>>, vector<8x4xf32>
    %c0_3 = arith.constant 0 : index
    %c0_4 = arith.constant 0 : index
    %3 = vector.load %arg5[%c0_3, %c0_4] : memref<8x128xf32, #tpu.memory_space<vmem>>, vector<8x4xf32>
    tpu.vector_store %arg5[%c0_3, %c0_4], %2 {strides = array<i32>} : memref<8x128xf32, #tpu.memory_space<vmem>>, vector<8x4xf32>,
    %c0_5 = arith.constant 0 : index
    %c0_6 = arith.constant 0 : index
    %4 = vector.load %arg5[%c0_5, %c0_6] : memref<8x128xf32, #tpu.memory_space<vmem>>, vector<8x128xf32>
    %5 = arith.truncf %4 : vector<8x128xf32> to vector<8x128xbf16>
    %c0_7 = arith.constant 0 : index
    %c0_8 = arith.constant 0 : index
    %c0_9 = arith.constant 0 : index
    %6 = vector.load %arg2[%c0_7, %c0_8, %c0_9] : memref<2x128x128xbf16, #tpu.memory_space<vmem>>, vector<1x128x128xbf16>
    %7 = vector.shape_cast %6 : vector<1x128x128xbf16> to vector<128x128xbf16>
    %cst_10 = arith.constant dense<0.000000e+00> : vector<8x128xf32>
    %8 = tpu.matmul %5, %7, %cst_10 {dimension_numbers = #tpu.dot_dimension_numbers<[1], [0], [0], [1], [0, 0, 1, 1], [], []>} : vector<8x128xbf16>, vector<128x128xbf16>, vector<8x128xf32> -> vector<8x128xf32>
    %c0_11 = arith.constant 0 : index
    %c0_12 = arith.constant 0 : index
    %9 = vector.load %arg3[%c0_11, %c0_12] : memref<2x128xf32, #tpu.memory_space<vmem>>, vector<1x128xf32>
    %10 = vector.broadcast %9 : vector<1x128xf32> to vector<8x128xf32>
    %11 = arith.addf %8, %10 : vector<8x128xf32>
    %cst_13 = arith.constant 0.000000e+00 : f32
    %12 = vector.broadcast %cst_13 : f32 to vector<8x128xf32>
    %13 = arith.maximumf %11, %12 : vector<8x128xf32>
    %c0_14 = arith.constant 0 : index
    %c0_15 = arith.constant 0 : index
    %14 = vector.load %arg6[%c0_14, %c0_15] : memref<8x128xf32, #tpu.memory_space<vmem>>, vector<8x128xf32>
    tpu.vector_store %arg6[%c0_14, %c0_15], %13 {strides = array<i32>} : memref<8x128xf32, #tpu.memory_space<vmem>>, vector<8x128xf32>,
    %c0_16 = arith.constant 0 : index
    %c0_17 = arith.constant 0 : index
    %15 = vector.load %arg6[%c0_16, %c0_17] : memref<8x128xf32, #tpu.memory_space<vmem>>, vector<8x128xf32>
    %16 = arith.truncf %15 : vector<8x128xf32> to vector<8x128xbf16>
    %c1 = arith.constant 1 : index
    %c0_18 = arith.constant 0 : index
    %c0_19 = arith.constant 0 : index
    %17 = vector.load %arg2[%c1, %c0_18, %c0_19] : memref<2x128x128xbf16, #tpu.memory_space<vmem>>, vector<1x128x128xbf16>
    %18 = vector.shape_cast %17 : vector<1x128x128xbf16> to vector<128x128xbf16>
    %cst_20 = arith.constant dense<0.000000e+00> : vector<8x128xf32>
    %19 = tpu.matmul %16, %18, %cst_20 {dimension_numbers = #tpu.dot_dimension_numbers<[1], [0], [0], [1], [0, 0, 1, 1], [], []>} : vector<8x128xbf16>, vector<128x128xbf16>, vector<8x128xf32> -> vector<8x128xf32>
    %c1_21 = arith.constant 1 : index
    %c0_22 = arith.constant 0 : index
    %20 = vector.load %arg3[%c1_21, %c0_22] : memref<2x128xf32, #tpu.memory_space<vmem>>, vector<1x128xf32>
    %21 = vector.broadcast %20 : vector<1x128xf32> to vector<8x128xf32>
    %22 = arith.addf %19, %21 : vector<8x128xf32>
    %cst_23 = arith.constant 0.000000e+00 : f32
    %23 = vector.broadcast %cst_23 : f32 to vector<8x128xf32>
    %24 = arith.maximumf %22, %23 : vector<8x128xf32>
    %c0_24 = arith.constant 0 : index
    %c0_25 = arith.constant 0 : index
    %25 = vector.load %arg4[%c0_24, %c0_25] : memref<8x128xf32, #tpu.memory_space<vmem>>, vector<8x128xf32>
    tpu.vector_store %arg4[%c0_24, %c0_25], %24 {strides = array<i32>} : memref<8x128xf32, #tpu.memory_space<vmem>>, vector<8x128xf32>,
    return
  }
  func.func @transform_0(%arg0: i32) -> (i32, i32) {
    %c0_i32 = arith.constant 0 : i32
    %c0_i32_0 = arith.constant 0 : i32
    return %arg0, %c0_i32 : i32, i32
  }
  func.func @transform_1(%arg0: i32) -> (i32, i32, i32) {
    %c0_i32 = arith.constant 0 : i32
    %c0_i32_0 = arith.constant 0 : i32
    %c0_i32_1 = arith.constant 0 : i32
    %c0_i32_2 = arith.constant 0 : i32
    return %c0_i32, %c0_i32_0, %c0_i32_1 : i32, i32, i32
  }
  func.func @transform_2(%arg0: i32) -> (i32, i32) {
    %c0_i32 = arith.constant 0 : i32
    %c0_i32_0 = arith.constant 0 : i32
    %c0_i32_1 = arith.constant 0 : i32
    return %c0_i32, %c0_i32_0 : i32, i32
  }
  func.func @transform_3(%arg0: i32) -> (i32, i32) {
    %c0_i32 = arith.constant 0 : i32
    %c0_i32_0 = arith.constant 0 : i32
    return %arg0, %c0_i32 : i32, i32
  }
}

</mosaic_0001>

<bundles_post_ra>
// kernel: _mlp_forward.1
= control target key start
LH: loop header
LB: loop body
LE: loop exit
PB: predicated region body
PF: predicated region fallthrough
CT: control target
= control target key end

     0   :  { %8 = vsyncpa [#allocation5], 0  ;;  %s491_s0 = inlined_call_operand.hbm [shape: f32[2,4], index: 0, kind: input, shape index: {}]   ;;  %s492_s1 = inlined_call_operand.hbm [shape: bf16[2,128,128], index: 1, kind: input, shape index: {}]   ;;  %s493_s2 = inlined_call_operand.hbm [shape: f32[2,128], index: 2, kind: input, shape index: {}]   ;;  %s494_s3 = inlined_call_operand.hbm [shape: f32[2,128], index: 3, kind: output, shape index: {}]  }
   0x1   :  { %9 = vsyncpa [#allocation8], 0 }
   0x2   :  { %10 = vsyncpa [#allocation6], 0  ;;  %s28_s14 = sshll.u32 %s492_s1, 4  ;;  %s29_s14 = int_to_ptr.hbm [resolvable:$true] %s28_s14 }
   0x3   :  { %14 = vsyncadd [#allocation5], 96  ;;  %s444_s15 = smov [#allocation7]   ;;  %s15_s19 = sshll.u32 %s491_s0, 4  ;;  %s16_s19 = int_to_ptr.hbm [resolvable:$true] %s15_s19 }
   0x4   :  { %s30_s16 = sshll.u32 %s444_s15, 4  ;;  %s445_s20 = smov 64   ;;  %s31_s16 = int_to_ptr.vmem [resolvable:$true] %s30_s16 }
   0x5   :  { %s446_s21 = smov 4   ;;  %s447_s22 = smov [#allocation4]  }
   0x6   :  { %36 = dma.hbm_to_vmem [thread:$0]  %s29_s14, 2048, %s31_s16, [#allocation8], %s445_s20, %s445_s20, %s446_s21  }
   0x7   :  { %s17_s23 = sshll.u32 %s447_s22, 4  ;;  %s448_s24 = smov 32   ;;  %s18_s23 = int_to_ptr.vmem [resolvable:$true] %s17_s23 }
   0x8   :  { %s449_s25 = smov 2   ;;  %s42_s27 = sshll.u32 %s493_s2, 4  ;;  %s43_s27 = int_to_ptr.hbm [resolvable:$true] %s42_s27 }
   0x9   :  { %23 = dma.hbm_to_vmem [thread:$0]  %s16_s19, 32, %s18_s23, [#allocation5], %s448_s24, %s448_s24, %s449_s25  }
   0xa   :  { %s450_s28 = smov [#allocation9]  }
   0xb   :  { %s44_s0 = sshll.u32 %s450_s28, 4  ;;  %s45_s0 = int_to_ptr.vmem [resolvable:$true] %s44_s0 }
   0xc   :  { %47 = dma.hbm_to_vmem [thread:$0]  %s43_s27, 32, %s45_s0, [#allocation8]  }
   0xd   :  { %438 = dma.done.wait [#allocation5], 128  }
   0xe   :  { %439 = vsyncadd [#allocation5], 4294967168 }
   0xf   :  { %440 = dma.done.wait [#allocation8], 2080  }
  0x10   :  { %441 = vsyncadd [#allocation8], 4294965216  ;;  %v451_v0 = vmov 0.0   ;;  %v322_v1 = vld [vmem:[#allocation7 + $0x38] sm:$0xff]  ;;  %vm62_vm0 = vcmask 31744   ;;  %v321_v2 = vld [vmem:[#allocation7 + $0x30] sm:$0xff] }
  0x11   :  { %60 = vst [vmem:[#allocation2] sm:$0xff] %v451_v0  ;;  %132 = vmatpush.bf16.msra.mxu0 %v322_v1  ;;  %v61_v3 = vld [vmem:[#allocation4] sm:$0xff]  ;;  %v329_v5 = vld [vmem:[#allocation7 + $0x70] sm:$0xff]  ;;  %v320_v6 = vld [vmem:[#allocation7 + $0x28] sm:$0xff] }
  0x12   :  { %63 = vst.msk [vmem:[#allocation2] sm:$0xff] %vm62_vm0, %v61_v3  ;;  %v330_v4 = vld [vmem:[#allocation7 + $0x78] sm:$0xff]  ;;  %v328_v7 = vld [vmem:[#allocation7 + $0x68] sm:$0xff]  ;;  %v319_v8 = vld [vmem:[#allocation7 + $0x20] sm:$0xff] }
  0x13   :  { %216 = vmatpush.bf16.msra.mxu1 %v330_v4  ;;  %v327_v9 = vld [vmem:[#allocation7 + $0x60] sm:$0xff]  ;;  %v318_v10 = vld [vmem:[#allocation7 + $0x18] sm:$0xff]  ;;  %v317_v12 = vld [vmem:[#allocation7 + $0x10] sm:$0xff] }
  0x14   :  { %v326_v11 = vld [vmem:[#allocation7 + $0x58] sm:$0xff]  ;;  %v325_v13 = vld [vmem:[#allocation7 + $0x50] sm:$0xff]  ;;  %v316_v14 = vld [vmem:[#allocation7 + $0x8] sm:$0xff] }
  0x15   :  { %133 = vmatpush.bf16.msra.mxu0 %v321_v2  ;;  %v315_v15 = vld [vmem:[#allocation7] sm:$0xff]  ;;  %v324_v18 = vld [vmem:[#allocation7 + $0x48] sm:$0xff] }
  0x16   :  { %v323_v19 = vld [vmem:[#allocation7 + $0x40] sm:$0xff] }
  0x17   :  { %217 = vmatpush.bf16.msra.mxu1 %v329_v5  ;;  %v340_v20 = vld [vmem:[#allocation9] ss:$0 sm:$0xff]  ;;  %v341_v26 = vld [vmem:[#allocation9 + $0x1] ss:$0 sm:$0xff] }
  0x19   :  { %134 = vmatpush.bf16.msra.mxu0 %v320_v6  ;;  %v64_v16 = vld [vmem:[#allocation2] sm:$0xff] }
  0x1a   :  { %v65_v17 = vpack.c.bf16 %v64_v16, %v64_v16 }
  0x1b   :  { %218 = vmatpush.bf16.msra.mxu1 %v328_v7 }
  0x1d   :  { %135 = vmatpush.bf16.msra.mxu0 %v319_v8 }
  0x1f   :  { %219 = vmatpush.bf16.msra.mxu1 %v327_v9 }
  0x21   :  { %136 = vmatpush.bf16.msra.mxu0 %v318_v10 }
  0x23   :  { %220 = vmatpush.bf16.msra.mxu1 %v326_v11 }
  0x25   :  { %137 = vmatpush.bf16.msra.mxu0 %v317_v12 }
  0x27   :  { %221 = vmatpush.bf16.msra.mxu1 %v325_v13 }
  0x29   :  { %138 = vmatpush.bf16.msra.mxu0 %v316_v14 }
  0x2b   :  { %222 = vmatpush.bf16.msra.mxu1 %v324_v18 }
  0x2d   :  { %139 = vmatpush.bf16.msra.mxu0 %v315_v15 }
  0x2f   :  { %223 = vmatpush.bf16.msra.mxu1 %v323_v19 }
  0x30   :  { %140 = vmatmul.bf16.vlgmr.msra.gmra.mxu0 %v65_v17 }
  0xad   :  { %v141_v21 = vpop.f32.mrf.mxu0 }
  0xae   :  { %v142_v22 = vadd.f32 %v340_v20, %v141_v21 }
  0xb0   :  { %v145_v23 = vmax.f32 %v142_v22, 0.0 }
  0xb2   :  { %v148_v24 = vpack.c.bf16 %v145_v23, %v145_v23 }
  0xb4   :  { %224 = vmatmul.bf16.vlgmr.msra.gmra.mxu1 %v148_v24 }
  0xb5   :  { %v143_v25 = vpop.f32.mrf.mxu0 }
 0x131   :  { %v225_v27 = vpop.f32.mrf.mxu1 }
 0x132   :  { %v226_v28 = vadd.f32 %v341_v26, %v225_v27 }
 0x134   :  { %v229_v29 = vmax.f32 %v226_v28, 0.0 }
 0x136   :  { %230 = vst [vmem:[#allocation10] sm:$0xff] %v229_v29 }
 0x139   :  { %v227_v30 = vpop.f32.mrf.mxu1 }
 0x13a   :  { %234 = vsyncadd [#allocation6], 96  ;;  %s237_s30 = sshll.u32 %s494_s3, 4  ;;  %s452_s4 = smov [#allocation10]   ;;  %s238_s30 = int_to_ptr.hbm [resolvable:$true] %s237_s30 }
 0x13b   :  { %s235_s5 = sshll.u32 %s452_s4, 4  ;;  %s236_s5 = int_to_ptr.vmem [resolvable:$true] %s235_s5 }
 0x13c   :  { %243 = dma.vmem_to_hbm [thread:$0]  %s236_s5, 32, %s238_s30, [#allocation6], %s448_s24, %s448_s24, %s449_s25  }
 0x13d   :  { %442 = dma.done.wait [#allocation6], 128  }
 0x13e   :  { %443 = vsyncadd [#allocation6], 4294967168 }
 0x13f   :  { %248 = vsyncpa [#allocation5], 1 }
 0x140   :  { %249 = vsyncpa [#allocation8], 1 }
 0x141   :  { %250 = vsyncpa [#allocation6], 1 }

</bundles_post_ra>
